<compile_context>
chip_gen: v7x
topology: tpu7x:2x2x1
jax: 0.10.0
libtpu: 0.0.40
codegen_flags: <defaults>
</compile_context>

<pallas_src>
import jax
import jax.numpy as jnp
from jax import lax
from jax.experimental import pallas as pl
from jax.experimental.pallas import tpu as pltpu

_LANE = 128
# Reduction-tile candidates in lane units (TN = u * 128): 32768 ... 256 lanes.
_TILE_UNIT_CANDIDATES = (256, 128, 64, 32, 16, 8, 4, 2)


def _cdiv(a, b):
    return -(-a // b)


# ---------------------------------------------------------------------------
# Kernel
# ---------------------------------------------------------------------------

def _partial_gram_kernel(f_ref, g_ref):
    """Accumulate the raw (unnormalized) partial gram for this split."""
    @pl.when(pl.program_id(1) == 0)
    def _():
        g_ref[...] = jnp.zeros_like(g_ref)

    # F_tile @ F_tile^T without materializing a transpose (contract axis 1 of
    # both operands).  pl.dot(f, f, trans_b=True) is the one-line alternative
    # if a vxpose ever shows up in the lowering dump.
    g_ref[...] += lax.dot_general(
        f_ref[...], f_ref[...],
        dimension_numbers=(((1,), (1,)), ((), ())),
        preferred_element_type=jnp.float32,
    )


# ---------------------------------------------------------------------------
# Per-generation tiling / VMEM helpers
# ---------------------------------------------------------------------------

def _vmem_capacity_bytes():
    try:
        cap = int(pltpu.get_tpu_info().vmem_capacity_bytes)
        if cap > 0:
            return cap
    except Exception:
        pass
    return 64 * 1024 * 1024  # conservative fallback: v7x per-TC VMEM


def _choose_tiling(n, k, itemsize, capacity, tile_n=None):
    """Returns (num_splits, steps, tn, n_padded)."""
    total_units = _cdiv(n, _LANE)
    num_splits = 2 if total_units >= 2 else 1
    per_split_units = _cdiv(total_units, num_splits)

    scoped = capacity // 2
    # double-buffered F tiles must fit next to the (possibly double-buffered)
    # (K, K) f32 output block plus a margin for internal scratch.
    f_budget = max(2 * 1024 * 1024, scoped - 2 * k * k * 4 - 2 * 1024 * 1024)

    if tile_n is not None:
        assert tile_n % _LANE == 0, tile_n
        u = tile_n // _LANE
    else:
        u = 1
        for cand in _TILE_UNIT_CANDIDATES:
            if 2 * k * cand * _LANE * itemsize > f_budget:
                continue
            steps_c = _cdiv(per_split_units, cand)
            waste = num_splits * steps_c * cand - total_units
            if waste * 8 <= total_units:  # keep zero-padding waste <= ~12.5%
                u = cand
                break

    steps = _cdiv(per_split_units, u)
    tn = u * _LANE
    n_padded = num_splits * steps * tn
    return num_splits, steps, tn, n_padded


def _vmem_limit_bytes(k, tn, itemsize, capacity):
    need = 2 * k * tn * itemsize + 2 * k * k * 4 + (1 << 20)
    limit = min(capacity // 2, max(16 << 20, 2 * need))
    return int(max(limit, need + (1 << 20)))


# ---------------------------------------------------------------------------
# Wrappers
# ---------------------------------------------------------------------------

def _partial_grams(x, *, stream_dtype=None, tile_n=None):
    """Streams F and returns (partials (num_splits,K,K) raw f32, 1/(K*N))."""
    b, c, h, w = x.shape
    k, n = b * c, h * w
    f = x.reshape(k, n)
    if stream_dtype is not None:
        f = f.astype(stream_dtype)  # e.g. bf16: halves HBM bytes, f32 accum
    itemsize = jnp.dtype(f.dtype).itemsize

    capacity = _vmem_capacity_bytes()
    num_splits, steps, tn, n_padded = _choose_tiling(
        n, k, itemsize, capacity, tile_n)
    if n_padded != n:
        # zero columns do not change F @ F^T
        f = jnp.pad(f, ((0, 0), (0, n_padded - n)))

    partials = pl.pallas_call(
        _partial_gram_kernel,
        out_shape=jax.ShapeDtypeStruct((num_splits, k, k), jnp.float32),
        grid_spec=pltpu.PrefetchScalarGridSpec(
            num_scalar_prefetch=0,
            grid=(num_splits, steps),
            in_specs=[pl.BlockSpec((k, tn), lambda p, i: (0, p * steps + i))],
            # each split accumulates into its own resident output slot
            out_specs=pl.BlockSpec((None, k, k), lambda p, i: (p, 0, 0)),
        ),
        compiler_params=pltpu.CompilerParams(
            dimension_semantics=("parallel", "arbitrary"),
            vmem_limit_bytes=_vmem_limit_bytes(k, tn, itemsize, capacity),
        ),
        cost_estimate=pl.CostEstimate(
            flops=2 * k * k * n_padded,
            transcendentals=0,
            bytes_accessed=k * n_padded * itemsize + num_splits * k * k * 4,
        ),
    )(f)
    return partials, 1.0 / float(k * n)


def gram_matrix(x, *, stream_dtype=None, tile_n=None):
    """x: (B, C, H, W) -> normalized gram matrix (B*C, B*C) float32."""
    partials, inv_total = _partial_grams(
        x, stream_dtype=stream_dtype, tile_n=tile_n)
    # tiny O(K^2) epilogue: combine per-TensorCore partials and normalize
    return jnp.sum(partials, axis=0) * inv_total


def style_loss(layer_input, gram_style, *, stream_dtype=None, tile_n=None):
    """Returns mse_loss(gram(layer_input), gram_style) as an f32 scalar."""
    partials, inv_total = _partial_grams(
        layer_input, stream_dtype=stream_dtype, tile_n=tile_n)
    g = jnp.sum(partials, axis=0) * inv_total
    diff = g - gram_style.astype(jnp.float32)
    return jnp.mean(diff * diff)


class StyleLoss:
    """JAX/Pallas port of the PyTorch StyleLoss module."""

    def __init__(self, target_feature, *, stream_dtype=None):
        self.stream_dtype = stream_dtype
        # G_{SL}, precomputed once ("detach" == no grad, inherently true here)
        self.gram_product_style = gram_matrix(
            target_feature, stream_dtype=stream_dtype)
        self.loss = None

    def __call__(self, layer_input):
        self.loss = style_loss(layer_input, self.gram_product_style,
                               stream_dtype=self.stream_dtype)
        return layer_input  # module passes its input through unchanged


# ---------------------------------------------------------------------------
# Pure-JAX reference for a correctness sanity check
# ---------------------------------------------------------------------------

def _ref_gram(x):
    b, c, h, w = x.shape
    f = x.reshape(b * c, h * w).astype(jnp.float32)
    return (f @ f.T) / jnp.float32(b * c * h * w)


def _ref_style_loss(layer_input, target_feature):
    gx = _ref_gram(layer_input)
    gs = _ref_gram(target_feature)
    return jnp.mean((gx - gs) ** 2)


# ---------------------------------------------------------------------------

if __name__ == "__main__":
    key = jax.random.PRNGKey(0)
    k1, k2, k3, k4 = jax.random.split(key, 4)

    # small NCHW feature maps: batch=2, channels=4, spatial=16x16
    target_feature = jax.random.normal(k1, (2, 4, 16, 16), dtype=jnp.float32)
    layer_input = jax.random.normal(k2, (2, 4, 16, 16), dtype=jnp.float32)

    module = StyleLoss(target_feature)
    out = module(layer_input)
    out = jax.block_until_ready(out)
    loss = jax.block_until_ready(module.loss)

    ref_loss = _ref_style_loss(layer_input, target_feature)
    assert out.shape == layer_input.shape
    assert jnp.allclose(out, layer_input)
    assert jnp.allclose(loss, ref_loss, rtol=1e-5, atol=1e-6), (loss, ref_loss)

    # Multi-step tiled reduction across both splits:
    # N=1024 -> 2 splits x 4 tiles of TN=128, exercising accumulate-then-combine.
    tf2 = jax.random.normal(k3, (2, 4, 32, 32), dtype=jnp.float32)
    li2 = jax.random.normal(k4, (2, 4, 32, 32), dtype=jnp.float32)
    gs2 = jax.block_until_ready(gram_matrix(tf2, tile_n=128))
    loss2 = jax.block_until_ready(style_loss(li2, gs2, tile_n=128))
    assert jnp.allclose(gs2, _ref_gram(tf2), rtol=1e-5, atol=1e-6)
    assert jnp.allclose(loss2, _ref_style_loss(li2, tf2), rtol=1e-5, atol=1e-6)

    # Non-lane-aligned N (H*W = 100): exercised via zero-padding to 128 lanes.
    tf3 = jax.random.normal(k3, (1, 8, 10, 10), dtype=jnp.float32)
    li3 = jax.random.normal(k4, (1, 8, 10, 10), dtype=jnp.float32)
    m3 = StyleLoss(tf3)
    m3(li3)
    loss3 = jax.block_until_ready(m3.loss)
    assert jnp.allclose(loss3, _ref_style_loss(li3, tf3), rtol=1e-5, atol=1e-6)

    # bf16 streaming path (halves HBM bytes; f32 accumulation) — loose check.
    m4 = StyleLoss(target_feature, stream_dtype=jnp.bfloat16)
    m4(layer_input)
    loss4 = jax.block_until_ready(m4.loss)
    assert jnp.allclose(loss4, ref_loss, rtol=1e-1, atol=1e-5), (loss4, ref_loss)

    print("KERNEL_OK")
</pallas_src>

<mosaic_0001>
module attributes {stable_mosaic.version = 11 : i64} {
  func.func @_partial_gram_kernel(%arg0: i32, %arg1: i32, %arg2: memref<8x128xf32, #tpu.memory_space<vmem>>, %arg3: memref<1x8x8xf32, #tpu.memory_space<vmem>>) attributes {dimension_semantics = [#tpu.dimension_semantics<parallel>, #tpu.dimension_semantics<arbitrary>], iteration_bounds = array<i64: 2, 1>, scalar_prefetch = 0 : i64, scratch_operands = 0 : i64, tpu.core_type = #tpu.core_type<tc>, window_params = [{transform_indices = @transform_0, window_bounds = array<i64: 8, 128>}, {transform_indices = @transform_1, window_bounds = array<i64: 1, 8, 8>}]} {
    %c0_i32 = arith.constant 0 : i32
    %0 = arith.cmpi eq, %arg1, %c0_i32 : i32
    %1 = arith.extui %0 : i1 to i32
    %c0_i32_0 = arith.constant 0 : i32
    %2 = arith.cmpi ne, %1, %c0_i32_0 : i32
    scf.if %2 {
      %cst_10 = arith.constant 0.000000e+00 : f32
      %12 = vector.broadcast %cst_10 : f32 to vector<8x8xf32>
      %c0_11 = arith.constant 0 : index
      %c0_12 = arith.constant 0 : index
      %c0_13 = arith.constant 0 : index
      %13 = vector.load %arg3[%c0_11, %c0_12, %c0_13] : memref<1x8x8xf32, #tpu.memory_space<vmem>>, vector<1x8x8xf32>
      %14 = vector.shape_cast %13 : vector<1x8x8xf32> to vector<8x8xf32>
      %15 = vector.shape_cast %12 : vector<8x8xf32> to vector<1x8x8xf32>
      tpu.vector_store %arg3[%c0_11, %c0_12, %c0_13], %15 {strides = array<i32>} : memref<1x8x8xf32, #tpu.memory_space<vmem>>, vector<1x8x8xf32>,
    } else {
    }
    %c0 = arith.constant 0 : index
    %c0_1 = arith.constant 0 : index
    %c0_2 = arith.constant 0 : index
    %3 = vector.load %arg3[%c0, %c0_1, %c0_2] : memref<1x8x8xf32, #tpu.memory_space<vmem>>, vector<1x8x8xf32>
    %4 = vector.shape_cast %3 : vector<1x8x8xf32> to vector<8x8xf32>
    %c0_3 = arith.constant 0 : index
    %c0_4 = arith.constant 0 : index
    %5 = vector.load %arg2[%c0_3, %c0_4] : memref<8x128xf32, #tpu.memory_space<vmem>>, vector<8x128xf32>
    %c0_5 = arith.constant 0 : index
    %c0_6 = arith.constant 0 : index
    %6 = vector.load %arg2[%c0_5, %c0_6] : memref<8x128xf32, #tpu.memory_space<vmem>>, vector<8x128xf32>
    %cst = arith.constant dense<0.000000e+00> : vector<8x8xf32>
    %7 = tpu.matmul %5, %6, %cst {dimension_numbers = #tpu.dot_dimension_numbers<[1], [1], [0], [0], [0, 0, 1, 0], [], []>} : vector<8x128xf32>, vector<8x128xf32>, vector<8x8xf32> -> vector<8x8xf32>
    %8 = arith.addf %4, %7 : vector<8x8xf32>
    %c0_7 = arith.constant 0 : index
    %c0_8 = arith.constant 0 : index
    %c0_9 = arith.constant 0 : index
    %9 = vector.load %arg3[%c0_7, %c0_8, %c0_9] : memref<1x8x8xf32, #tpu.memory_space<vmem>>, vector<1x8x8xf32>
    %10 = vector.shape_cast %9 : vector<1x8x8xf32> to vector<8x8xf32>
    %11 = vector.shape_cast %8 : vector<8x8xf32> to vector<1x8x8xf32>
    tpu.vector_store %arg3[%c0_7, %c0_8, %c0_9], %11 {strides = array<i32>} : memref<1x8x8xf32, #tpu.memory_space<vmem>>, vector<1x8x8xf32>,
    return
  }
  func.func @transform_0(%arg0: i32, %arg1: i32) -> (i32, i32) {
    %c1_i32 = arith.constant 1 : i32
    %0 = arith.muli %arg0, %c1_i32 : i32
    %1 = arith.addi %0, %arg1 : i32
    %c0_i32 = arith.constant 0 : i32
    %c0_i32_0 = arith.constant 0 : i32
    return %c0_i32, %1 : i32, i32
  }
  func.func @transform_1(%arg0: i32, %arg1: i32) -> (i32, i32, i32) {
    %c0_i32 = arith.constant 0 : i32
    %c0_i32_0 = arith.constant 0 : i32
    %c0_i32_1 = arith.constant 0 : i32
    return %arg0, %c0_i32, %c0_i32_0 : i32, i32, i32
  }
}

</mosaic_0001>

<bundles_post_ra>
// kernel: tpu_custom_call.1
= control target key start
LH: loop header
LB: loop body
LE: loop exit
PB: predicated region body
PF: predicated region fallthrough
CT: control target
= control target key end

     0   :  { %6 = vsyncpa [#allocation3], 0  ;;  %s708_s0 = inlined_call_operand.hbm [shape: f32[8,256], index: 0, kind: input, shape index: {}]   ;;  %s709_s1 = inlined_call_operand.hbm [shape: f32[2,8,8], index: 1, kind: output, shape index: {}]  }
   0x1   :  { %8 = vsyncpa [#allocation3 + $0x1], 0 }
   0x2   :  { %9 = vsyncpa [#allocation4], 0 }
   0x3   :  { %11 = vsyncpa [#allocation4 + $0x1], 0  ;;  %s534_s6 = smov 0   ;;  %s536_s7 = smov 0  }
   0x4   :  { %s538_s8 = smov 0   ;;  %s540_s9 = smov 0  }
   0x5   :  { %s542_s10 = smov 0   ;;  %s544_s11 = smov 0  }
   0x6 LB: > { %s322_s12 = sadd.s32 4294967295, %s518_s11   ;;  %s323_s13 = sadd.s32 4294967294, %s518_s11   ;;  %s518_s11 = sphi %s544_s11, %s17_s11   ;;  %s514_s10 = sphi %s542_s10, %s725_s10   ;;  %s510_s9 = sphi %s540_s9, %s724_s9   ;;  %s506_s8 = sphi %s538_s8, %s723_s8   ;;  %s502_s7 = sphi %s536_s7, %s722_s7   ;;  %s498_s6 = sphi %s534_s6, %s721_s6  }
   0x7   : > { %s29_s14 = sadd.s32 1, %s514_s10  ;;  %s38_s15 = sadd.s32 1, %s506_s8 }
   0x8   : > { %p31_p0 = scmp.ge.s32.totalorder %s29_s14, 2  ;;  %p45_p1 = scmp.ne.s32.totalorder %s506_s8, %s502_s7 }
   0x9   : > { %p46_p2 = scmp.eq.s32.totalorder %s518_s11, 0  ;;  %p51_p3 = scmp.ne.s32.totalorder %s502_s7, %s498_s6 }
   0xa   : > { %s727_s14 = smov (%p31_p0, %s29_s14), 0  ;;  %p52_p5 = scmp.eq.s32.totalorder %s322_s12, 0 }
   0xb   : > { %p575_p4 = por %p46_p2, %p45_p1  ;;  %s35_s17 = ssub.s32 %s514_s10, %s727_s14 }
   0xc   : > { %p75_p6 = scmp.eq.s32.totalorder %s322_s12, 1  ;;  %p36_p7 = scmp.eq.s32.totalorder %s35_s17, 0 }
   0xd   : > { %p581_p8 = por %p52_p5, %p51_p3  ;;  %p81_p10 = scmp.eq.s32.totalorder %s323_s13, 1 }
   0xe   : > { %p585_p9 = por %p75_p6, %p45_p1  ;;  %p354_p13 = scmp.lt.s32.totalorder %s518_s11, 2 }
   0xf   : > { %s590_s20 = scalar_select %p36_p7, %s506_s8, %s38_s15  }
  0x10   : > { %s713_s19 = scalar_select %p585_p9, 1, 0 }
  0x11   : > { %p592_p11 = por %p81_p10, %p51_p3  ;;  %s101_s22 = sand.u32 1, %s506_s8  }
  0x12   : > { %s326_s23 = sshll.u32 %s101_s22, 3  ;;  %s327_s24 = sshll.u32 %s514_s10, 7 }
  0x13   : > { %s714_s21 = scalar_select %p592_p11, 1, 0 }
  0x14   : > { %s603_s27 = scalar_lea.hbm %s708_s0, %s327_s24  ;;  %s105_s28 = scalar_lea.vmem [#allocation2], %s326_s23 }
  0x15   : > { %s113_s29 = sshll.u32 %s105_s28, 4  ;;  %p609_p0 = pnand %p354_p13, %p575_p4  ;;  %s605_s29 = int_to_ptr.vmem [resolvable:$true] %s113_s29 }
  0x16   : > { %s102_s2 = scalar_lea.sflag [#allocation3], %s101_s22  ;;  %s406_s3 = scalar_lea.hbm %s603_s27, 128 }
  0x17   : > { %p407_p3 = scmp.ne.s32.totalorder %s603_s27, %s406_s3  ;;  %p408_p5 = pneg %p609_p0 }
  0x18   : > { %s411_s12 = scalar_lea.hbm %s708_s0, 256  ;;  %p412_p4 = scmp.lt.u32.totalorder %s603_s27, %s708_s0 }
  0x19   : > { %p409_p6 = pnand %p408_p5, %p407_p3  ;;  %p413_p10 = scmp.lt.u32.totalorder %s411_s12, %s406_s3 }
  0x1a   : > { %p415_p12 = scmp.lt.u32.totalorder %s406_s3, %s603_s27 }
  0x1b   : > { %p410_p7 = pneg %p409_p6  ;;  %p414_p13 = por %p413_p10, %p412_p4 }
  0x1d   : > { %p416_p1 = por %p415_p12, %p414_p13 }
  0x1f   : > { %p417_p2 = pnand %p416_p1, %p410_p7 }
  0x21   : > { %420 = shalt.err (!%p417_p2)
}
  0x22   : > { %s421_s16 = scalar_lea.vmem %s605_s29, 128  ;;  %s520_s17 = smov [#allocation2]  }
  0x23   : > { %p422_p3 = scmp.ne.s32.totalorder %s605_s29, %s421_s16  ;;  %s426_s22 = sshll.u32 %s520_s17, 4  ;;  %s427_s22 = int_to_ptr.vmem [resolvable:$false] %s426_s22 }
  0x24   : > { %s428_s23 = scalar_lea.vmem %s427_s22, 256  ;;  %p429_p9 = scmp.lt.s32.totalorder %s605_s29, %s427_s22 }
  0x25   : > { %p424_p6 = pnand %p422_p3, %p408_p5  ;;  %p430_p4 = scmp.lt.s32.totalorder %s428_s23, %s421_s16 }
  0x27   : > { %p425_p11 = pneg %p424_p6  ;;  %p431_p10 = por %p430_p4, %p429_p9 }
  0x29   : > { %p432_p12 = pnand %p431_p10, %p425_p11 }
  0x2b   : > { %435 = shalt.err (!%p432_p12)
}
  0x2c   : > { %349 = dma.hbm_to_vmem [thread:$0]  (!%p609_p0), %s603_s27, 128, %s605_s29, %s102_s2  }
  0x2d   : > { %p716_p1 = scmp.lt.s32.totalorder %s518_s11, 3  ;;  %p717_p2 = scmp.ge.s32.totalorder %s518_s11, 1 }
  0x2f   : > { %p119_p5 = pnand %p717_p2, %p716_p1 }
  0x30   : > { %s645_s24 = sand.u32 (!%p119_p5), 1, %s502_s7  }
  0x31   : > { %122 = sbr.rel (%p119_p5) target bundleno = 290 (0x122), region = 24  ;;  %s329_s25 = sshll.u32 (!%p119_p5), %s645_s24, 3 }
  0x32   : > { %s125_s26 = scalar_lea.sflag (!%p119_p5), [#allocation3], %s645_s24  ;;  %s128_s28 = scalar_lea.vmem (!%p119_p5), [#allocation2], %s329_s25 }
  0x38   : > { %489 = dma.done.wait (%p581_p8), %s125_s26, 128  }
  0x39   : > { %491 = vsyncadd (%p581_p8), %s125_s26, 4294967168  ;;  %vm152_vm0 = vcmask 64512   ;;  %v521_v0 = vmov 0.0   ;;  %vm522_vm1 = vmmov 0   ;;  %s146_s27 = scalar_lea.vmem [#allocation5], %s329_s25  ;;  %v155_v1 = vld [vmem:[%s128_s28] sm:$0xff] }
  0x3a   : > { %337 = vmatprep.subr.mxu0 %v521_v0  ;;  %339 = vmatprep.mubr.msk.f32.mxu0 %vm522_vm1, %v521_v0  ;;  %153 = vst.msk [vmem:[%s146_s27] sm:$0xff] %vm152_vm0, %v521_v0  ;;  %s332_s29 = sshll.u32 %s510_s9, 7  ;;  %s243_s30 = sshll.u32 %s146_s27, 4  ;;  %s660_s30 = int_to_ptr.vmem [resolvable:$true] %s243_s30 }
  0x3b   : > { %338 = vmatpush3.xpose.msra.mxu0 %v155_v1  ;;  %s658_s3 = scalar_lea.hbm %s709_s1, %s332_s29  ;;  %s230_s4 = scalar_lea.sflag [#allocation4], %s645_s24 }
  0x3c   : > { %s436_s5 = scalar_lea.vmem %s660_s30, 128  ;;  %p718_p9 = scmp.ne.s32.totalorder %s713_s19, 0 }
  0x3d   : > { %p437_p8 = scmp.ne.s32.totalorder %s660_s30, %s436_s5  ;;  %s523_s9 = smov [#allocation5]  }
  0x3e   : > { %340 = vmatmul.mubr.f32.vlgmr.msra.gmra.mrb[0].mxu0 %v155_v1  ;;  %s440_s12 = sshll.u32 %s523_s9, 4  ;;  %s441_s12 = int_to_ptr.vmem [resolvable:$false] %s440_s12 }
  0x3f   : > { %p438_p11 = pnand %p437_p8, %p718_p9  ;;  %s442_s13 = scalar_lea.vmem %s441_s12, 256 }
  0x40   : > { %p443_p7 = scmp.lt.s32.totalorder %s660_s30, %s441_s12  ;;  %p444_p13 = scmp.lt.s32.totalorder %s442_s13, %s436_s5 }
  0x41   : > { %v154_v2 = vld [vmem:[%s146_s27] sm:$0xff]  ;;  %p439_p0 = pneg %p438_p11 }
  0x42   : > { %p445_p3 = por %p444_p13, %p443_p7 }
  0x44   : > { %p446_p6 = pnand %p445_p3, %p439_p0 }
 0x111   : > { %v222_v3 = vpop.f32.mrb[0].mxu0 }
 0x112   : > { %v226_v4 = vadd.f32 %v222_v3, %v154_v2  ;;  %v341_v5 = vpop.f32.mrb[1].mxu0 }
 0x114   : > { %228 = vst.msk [vmem:[%s146_s27] sm:$0xff] %vm152_vm0, %v226_v4 }
 0x115   : > { %449 = shalt.err (!%p446_p6)
}
 0x116   : > { %s450_s15 = scalar_lea.hbm %s658_s3, 128  ;;  %s454_s22 = scalar_lea.hbm %s709_s1, 256 }
 0x117   : > { %p451_p4 = scmp.ne.s32.totalorder %s658_s3, %s450_s15  ;;  %p455_p1 = scmp.lt.u32.totalorder %s658_s3, %s709_s1 }
 0x118   : > { %p456_p2 = scmp.lt.u32.totalorder %s454_s22, %s450_s15  ;;  %p458_p8 = scmp.lt.u32.totalorder %s450_s15, %s658_s3 }
 0x119   : > { %p452_p10 = pnand %p451_p4, %p718_p9 }
 0x11a   : > { %p457_p5 = por %p456_p2, %p455_p1 }
 0x11b   : > { %p453_p12 = pneg %p452_p10 }
 0x11c   : > { %p459_p11 = por %p458_p8, %p457_p5 }
 0x11e   : > { %p460_p0 = pnand %p459_p11, %p453_p12 }
 0x120   : > { %463 = shalt.err (!%p460_p0)
}
 0x121   : > { %344 = dma.vmem_to_hbm [thread:$0]  (%p718_p9), %s660_s30, 128, %s658_s3, %s230_s4  }
 0x122 PF: > { %s255_s25 = sand.u32 1, %s498_s6   ;;  %p719_p7 = scmp.ne.s32.totalorder %s714_s21, 0 }
 0x123   : > { %p720_p13 = scmp.ge.s32.totalorder %s518_s11, 2  ;;  %s256_s26 = scalar_lea.sflag [#allocation4], %s255_s25 }
 0x125   : > { %p351_p3 = pnand %p720_p13, %p719_p7 }
 0x127   : > { %493 = dma.done.wait (!%p351_p3), %s256_s26, 128  }
 0x128   : > { %495 = vsyncadd (!%p351_p3), %s256_s26, 4294967168  ;;  %s17_s11 = sadd.s32 1, %s518_s11   ;;  %s721_s6 = smov %s502_s7 }
 0x129   : > { %p14_p6 = scmp.ge.s32.totalorder %s17_s11, 4   ;;  %s722_s7 = smov %s506_s8 }
 0x12a   : > { %s723_s8 = smov %s590_s20  ;;  %s724_s9 = smov %s514_s10 }
 0x12b   : > { %s725_s10 = smov %s727_s14  ;;  %16 = sbr.rel (!%p14_p6) target bundleno = 6 (0x6), region = 73 }
 0x132   :  { %261 = vsyncpa [#allocation3], 1 }
 0x133   :  { %263 = vsyncpa [#allocation3 + $0x1], 1 }
 0x134   :  { %264 = vsyncpa [#allocation4], 1 }
 0x135   :  { %266 = vsyncpa [#allocation4 + $0x1], 1 }

</bundles_post_ra>
